<compile_context>
chip_gen: v5e
topology: v5e:2x2
jax: 0.10.0
libtpu: 0.0.40
codegen_flags: <defaults>
</compile_context>

<pallas_src>
import functools

import jax
import jax.numpy as jnp
from jax import lax
from jax.experimental import pallas as pl
from jax.experimental.pallas import tpu as pltpu

LN_EPS = 1e-5
_INV_SQRT2 = 0.7071067811865476


def _round_up(x, m):
    return ((x + m - 1) // m) * m


def _tpu_budget():
    """Return (vmem_budget_bytes, num_tensorcores) with conservative fallbacks."""
    vmem_cap = None
    try:
        vmem_cap = int(pltpu.get_tpu_info().vmem_capacity_bytes)
    except Exception:
        vmem_cap = None
    kind = ""
    try:
        kind = (jax.devices()[0].device_kind or "").lower()
    except Exception:
        pass
    if vmem_cap is None:
        vmem_cap = 64 * 1024 * 1024 if "v7" in kind else 128 * 1024 * 1024
    # ~7/8 of physical VMEM, capped at 100 MiB of scoped VMEM:
    #   128-MiB chips (v5e/v6e) -> 100 MiB, 64-MiB chips (v7x per TC) -> 56 MiB.
    budget = min((vmem_cap * 7) // 8, 100 * 1024 * 1024)
    num_cores = 2 if "v7" in kind else 1
    return budget, num_cores


def _layernorm_f32(x_f32, gamma, beta, true_d, padded_d):
    """Two-pass LayerNorm in f32; padded lanes masked so they don't bias the variance."""
    inv_d = jnp.float32(1.0 / true_d)
    mean = jnp.sum(x_f32, axis=-1, keepdims=True) * inv_d   # pad lanes of x are zero
    xc = x_f32 - mean
    if padded_d != true_d:
        col = lax.broadcasted_iota(jnp.int32, x_f32.shape, x_f32.ndim - 1)
        xc = jnp.where(col < true_d, xc, 0.0)
    var = jnp.sum(xc * xc, axis=-1, keepdims=True) * inv_d
    xn = xc * lax.rsqrt(var + LN_EPS)
    return xn * gamma + beta                                  # gamma/beta zero-padded


def _gelu(h, exact):
    if exact:
        # Exact erf-GELU: matches torch nn.GELU() default numerics.
        return 0.5 * h * (1.0 + lax.erf(h * _INV_SQRT2))
    # tanh-approx variant (EUP slot) for VALU-bound small-D cases.
    return jax.nn.gelu(h, approximate=True)


# ----------------------------------------------------------------------------------
# Path A: weights resident in VMEM, single (row-tile) grid axis.
# ----------------------------------------------------------------------------------
def _ffn_kernel_fused(x_ref, gamma_ref, beta_ref, w1_ref, b1_ref, w2_ref, b2_ref,
                      o_ref, *, true_d, padded_d, exact_gelu):
    xn = _layernorm_f32(x_ref[...].astype(jnp.float32), gamma_ref[...], beta_ref[...],
                        true_d, padded_d)
    h = jnp.dot(xn.astype(jnp.bfloat16), w1_ref[...],
                preferred_element_type=jnp.float32) + b1_ref[...]
    h = _gelu(h, exact_gelu)
    # Dropout(p=0.0) is identity in forward.
    y = jnp.dot(h.astype(jnp.bfloat16), w2_ref[...],
                preferred_element_type=jnp.float32) + b2_ref[...]
    o_ref[...] = y.astype(o_ref.dtype)


# ----------------------------------------------------------------------------------
# Path B: inner-dim chunked reduction (for weights too large to keep resident).
# ----------------------------------------------------------------------------------
def _ffn_kernel_chunked(x_ref, gamma_ref, beta_ref, w1_ref, b1_ref, w2_ref, b2_ref,
                        o_ref, *scratch, true_d, padded_d, exact_gelu, acc_in_out):
    if acc_in_out:            # f32 output: accumulate directly into the resident o_ref
        (xn_ref,) = scratch
        acc_ref = o_ref
    else:                     # non-f32 output: dedicated f32 accumulator scratch
        acc_ref, xn_ref = scratch

    j = pl.program_id(1)

    @pl.when(j == 0)
    def _init():
        xn = _layernorm_f32(x_ref[...].astype(jnp.float32), gamma_ref[...],
                            beta_ref[...], true_d, padded_d)
        xn_ref[...] = xn.astype(xn_ref.dtype)            # bf16 MXU LHS, reused across j
        acc_ref[...] = jnp.zeros_like(acc_ref)

    h = jnp.dot(xn_ref[...], w1_ref[...], preferred_element_type=jnp.float32)
    h = h + b1_ref[...]
    h = _gelu(h, exact_gelu)
    acc_ref[...] += jnp.dot(h.astype(jnp.bfloat16), w2_ref[...],
                            preferred_element_type=jnp.float32)

    @pl.when(j == pl.num_programs(1) - 1)
    def _finish():
        o_ref[...] = (acc_ref[...] + b2_ref[...]).astype(o_ref.dtype)


# ----------------------------------------------------------------------------------
# One-time parameter preparation (hoisted pad + bf16 cast of weights).
# ----------------------------------------------------------------------------------
def prepare_ffn_params(gamma, beta, w1, b1, w2, b2):
    """Pad params to 128-lane multiples and cast weights to bf16 ONCE (per perf review)."""
    D, inner = w1.shape
    Dp = _round_up(D, 128)
    innerp = _round_up(inner, 128)
    f32, bf16 = jnp.float32, jnp.bfloat16

    def pad2(a, shape, dtype):
        a = a.astype(dtype)
        if a.shape == shape:
            return a
        return jnp.zeros(shape, dtype).at[:a.shape[0], :a.shape[1]].set(a)

    return dict(
        D=D, inner=inner, Dp=Dp, innerp=innerp,
        gamma=pad2(gamma.reshape(1, D), (1, Dp), f32),
        beta=pad2(beta.reshape(1, D), (1, Dp), f32),
        w1=pad2(w1, (Dp, innerp), bf16),
        b1=pad2(b1.reshape(1, inner), (1, innerp), f32),
        w2=pad2(w2, (innerp, Dp), bf16),
        b2=pad2(b2.reshape(1, D), (1, Dp), f32),
    )


def ffn_pallas_prepared(x, params, *, block_rows=1024, block_inner=512,
                        exact_gelu=True, force_inner_chunks=False):
    """x: (..., D) with D == params['D']."""
    D, inner = params["D"], params["inner"]
    Dp, innerp = params["Dp"], params["innerp"]
    assert x.shape[-1] == D
    lead = x.shape[:-1]
    rows = 1
    for s in lead:
        rows *= int(s)

    xbytes = jnp.dtype(x.dtype).itemsize
    obytes = xbytes
    budget, num_cores = _tpu_budget()

    # ---- row tile ---------------------------------------------------------------
    rows8 = max(8, _round_up(rows, 8))
    tm = min(_round_up(block_rows, 8), rows8)
    # Megacore (2-TC parts): split rows across cores only when each tile keeps >= 256
    # rows (stays above the per-TC weight-streaming roofline knee). Never on 1-TC chips.
    if num_cores >= 2:
        per_core = _round_up(pl.cdiv(rows8, num_cores), 8)
        if per_core >= 256:
            tm = min(tm, per_core)

    # ---- inner (reduction) chunk for path B: multiple of 128 dividing innerp -----
    q = innerp // 128
    target = max(1, min(q, _round_up(block_inner, 128) // 128))
    best = 1
    for d in range(1, q + 1):
        if q % d == 0 and d <= target:
            best = d
    tn = best * 128

    acc_in_out = (x.dtype == jnp.float32)

    # ---- explicit per-step VMEM estimates, used to shrink tm to fit ---------------
    def est_fused(tm_):
        weights = 2 * 2 * (Dp * innerp) * 2            # W1+W2 bf16 (conservative 2 bufs)
        tiles = 2 * tm_ * Dp * (xbytes + obytes)       # x + out, double buffered
        temps = tm_ * Dp * 10 + tm_ * innerp * 6       # LN/xn/out temps + hidden f32/bf16
        return weights + tiles + temps + 8 * (Dp + innerp) * 4

    def est_chunked(tm_):
        weights = 2 * 2 * (Dp * tn) * 2                # W1/W2 chunks, double buffered
        tiles = 2 * tm_ * Dp * (xbytes + obytes)
        scr = tm_ * Dp * 2 + (0 if acc_in_out else tm_ * Dp * 4)
        temps = tm_ * Dp * 4 + tm_ * tn * 6
        return weights + tiles + scr + temps + 8 * (Dp + tn) * 4

    use_fused = not force_inner_chunks
    if use_fused:
        tmf = tm
        while est_fused(tmf) > budget and tmf > 64:
            tmf = max(64, _round_up(tmf // 2, 8))
        if est_fused(tmf) <= budget:
            tm = tmf
        else:
            use_fused = False                          # weights too big -> chunked path
    if not use_fused:
        while est_chunked(tm) > budget and tm > 8:
            tm = max(8, _round_up(tm // 2, 8))

    rows_p = _round_up(rows, tm)
    est = est_fused(tm) if use_fused else est_chunked(tm)
    vmem_limit = int(min(max(2 * est, 32 * 1024 * 1024), budget))

    # ---- stage x (skip padding copy entirely when already lane/row dense) --------
    x2 = x.reshape(rows, D)
    if rows_p == rows and Dp == D:
        x_p = x2
    else:
        x_p = jnp.zeros((rows_p, Dp), x.dtype).at[:rows, :D].set(x2)

    if use_fused:
        kernel = functools.partial(_ffn_kernel_fused, true_d=D, padded_d=Dp,
                                   exact_gelu=exact_gelu)
        grid_spec = pltpu.PrefetchScalarGridSpec(
            num_scalar_prefetch=0,
            grid=(rows_p // tm,),
            in_specs=[
                pl.BlockSpec((tm, Dp), lambda i: (i, 0)),        # x row tile
                pl.BlockSpec((1, Dp), lambda i: (0, 0)),          # gamma
                pl.BlockSpec((1, Dp), lambda i: (0, 0)),          # beta
                pl.BlockSpec((Dp, innerp), lambda i: (0, 0)),     # W1 (resident, DMA'd once)
                pl.BlockSpec((1, innerp), lambda i: (0, 0)),      # b1
                pl.BlockSpec((innerp, Dp), lambda i: (0, 0)),     # W2 (resident, DMA'd once)
                pl.BlockSpec((1, Dp), lambda i: (0, 0)),          # b2
            ],
            out_specs=pl.BlockSpec((tm, Dp), lambda i: (i, 0)),
            scratch_shapes=[],
        )
        dim_sem = ("parallel",)
    else:
        scratch = [pltpu.VMEM((tm, Dp), jnp.bfloat16)]           # normalized rows (MXU LHS)
        if not acc_in_out:
            scratch = [pltpu.VMEM((tm, Dp), jnp.float32)] + scratch
        kernel = functools.partial(_ffn_kernel_chunked, true_d=D, padded_d=Dp,
                                   exact_gelu=exact_gelu, acc_in_out=acc_in_out)
        grid_spec = pltpu.PrefetchScalarGridSpec(
            num_scalar_prefetch=0,
            grid=(rows_p // tm, innerp // tn),
            in_specs=[
                pl.BlockSpec((tm, Dp), lambda i, j: (i, 0)),      # x row tile (resident over j)
                pl.BlockSpec((1, Dp), lambda i, j: (0, 0)),       # gamma
                pl.BlockSpec((1, Dp), lambda i, j: (0, 0)),       # beta
                pl.BlockSpec((Dp, tn), lambda i, j: (0, j)),      # W1 chunk
                pl.BlockSpec((1, tn), lambda i, j: (0, j)),       # b1 chunk
                pl.BlockSpec((tn, Dp), lambda i, j: (j, 0)),      # W2 chunk
                pl.BlockSpec((1, Dp), lambda i, j: (0, 0)),       # b2
            ],
            out_specs=pl.BlockSpec((tm, Dp), lambda i, j: (i, 0)),
            scratch_shapes=scratch,
        )
        dim_sem = ("parallel", "arbitrary")

    out_p = pl.pallas_call(
        kernel,
        out_shape=jax.ShapeDtypeStruct((rows_p, Dp), x.dtype),
        grid_spec=grid_spec,
        compiler_params=pltpu.CompilerParams(
            dimension_semantics=dim_sem,
            vmem_limit_bytes=vmem_limit,
        ),
    )(x_p, params["gamma"], params["beta"], params["w1"], params["b1"],
      params["w2"], params["b2"])

    if rows_p == rows and Dp == D:
        return out_p.reshape(*lead, D)
    return out_p[:rows, :D].reshape(*lead, D)


def ffn_pallas(x, gamma, beta, w1, b1, w2, b2, **kwargs):
    """Convenience wrapper (pads/casts params per call; prefer prepare_ffn_params)."""
    return ffn_pallas_prepared(x, prepare_ffn_params(gamma, beta, w1, b1, w2, b2), **kwargs)


# ----------------------------------------------------------------------------------
# References.
# ----------------------------------------------------------------------------------
def ffn_reference(x, gamma, beta, w1, b1, w2, b2):
    """Plain JAX f32 reference replicating the PyTorch forward exactly."""
    xf = x.astype(jnp.float32)
    mean = jnp.mean(xf, axis=-1, keepdims=True)
    var = jnp.mean((xf - mean) ** 2, axis=-1, keepdims=True)
    xn = (xf - mean) / jnp.sqrt(var + LN_EPS)
    xn = xn * gamma + beta
    h = xn @ w1 + b1
    h = 0.5 * h * (1.0 + lax.erf(h * _INV_SQRT2))
    y = h @ w2 + b2
    return y.astype(x.dtype)


def ffn_reference_bf16(x, gamma, beta, w1, b1, w2, b2):
    """Reference with the same bf16 MXU-operand boundaries / LN form as the kernel."""
    xf = x.astype(jnp.float32)
    mean = jnp.mean(xf, axis=-1, keepdims=True)
    xc = xf - mean
    var = jnp.mean(xc * xc, axis=-1, keepdims=True)
    xn = xc * lax.rsqrt(var + LN_EPS)
    xn = xn * gamma + beta
    h = jnp.dot(xn.astype(jnp.bfloat16), w1.astype(jnp.bfloat16),
                preferred_element_type=jnp.float32) + b1
    h = 0.5 * h * (1.0 + lax.erf(h * _INV_SQRT2))
    y = jnp.dot(h.astype(jnp.bfloat16), w2.astype(jnp.bfloat16),
                preferred_element_type=jnp.float32) + b2
    return y.astype(x.dtype)


if __name__ == "__main__":
    def make_params(key, D, inner):
        kw1, kb1, kw2, kb2 = jax.random.split(key, 4)
        bound1 = 1.0 / float(D) ** 0.5
        bound2 = 1.0 / float(inner) ** 0.5
        w1 = jax.random.uniform(kw1, (D, inner), jnp.float32, -bound1, bound1)
        b1 = jax.random.uniform(kb1, (inner,), jnp.float32, -bound1, bound1)
        w2 = jax.random.uniform(kw2, (inner, D), jnp.float32, -bound2, bound2)
        b2 = jax.random.uniform(kb2, (D,), jnp.float32, -bound2, bound2)
        gamma = jnp.ones((D,), jnp.float32)      # LayerNorm init: weight=1, bias=0
        beta = jnp.zeros((D,), jnp.float32)
        return gamma, beta, w1, b1, w2, b2

    key = jax.random.PRNGKey(0)
    k1, k2, k3, k4 = jax.random.split(key, 4)

    # --- Test 1: FFN(dim=32, mult=4); fused (weights-resident) path; exercises
    #             row- and lane-padding + padded-lane LN masking.
    B, N, D = 2, 7, 32
    inner = 4 * D
    x = jax.random.normal(k1, (B, N, D), dtype=jnp.float32)
    gamma, beta, w1, b1, w2, b2 = make_params(k2, D, inner)
    params = prepare_ffn_params(gamma, beta, w1, b1, w2, b2)   # hoisted pad/cast
    out = jax.block_until_ready(ffn_pallas_prepared(x, params))
    assert out.shape == (B, N, D)
    ref_b = ffn_reference_bf16(x, gamma, beta, w1, b1, w2, b2)
    ref_f = ffn_reference(x, gamma, beta, w1, b1, w2, b2)
    assert jnp.allclose(out, ref_b, atol=5e-3, rtol=5e-3), "T1 mismatch vs bf16-boundary ref"
    assert jnp.allclose(out, ref_f, atol=1e-1, rtol=1e-1), "T1 mismatch vs f32 ref"

    # --- Test 2: FFN(dim=256, mult=4); force the chunked-reduction fallback path
    #             (4 inner chunks), accumulating directly into the f32 output block.
    B, N, D = 2, 64, 256
    inner = 4 * D
    x = jax.random.normal(k3, (B, N, D), dtype=jnp.float32)
    gamma, beta, w1, b1, w2, b2 = make_params(k4, D, inner)
    params = prepare_ffn_params(gamma, beta, w1, b1, w2, b2)
    out = jax.block_until_ready(
        ffn_pallas_prepared(x, params, force_inner_chunks=True, block_inner=256))
    assert out.shape == (B, N, D)
    ref_b = ffn_reference_bf16(x, gamma, beta, w1, b1, w2, b2)
    ref_f = ffn_reference(x, gamma, beta, w1, b1, w2, b2)
    assert jnp.allclose(out, ref_b, atol=5e-3, rtol=5e-3), "T2 mismatch vs bf16-boundary ref"
    assert jnp.allclose(out, ref_f, atol=1e-1, rtol=1e-1), "T2 mismatch vs f32 ref"

    print("KERNEL_OK")
</pallas_src>

<mosaic_0001>
module attributes {stable_mosaic.version = 11 : i64} {
  func.func @_ffn_kernel_fused(%arg0: i32, %arg1: memref<16x128xf32, #tpu.memory_space<vmem>>, %arg2: memref<1x128xf32, #tpu.memory_space<vmem>>, %arg3: memref<1x128xf32, #tpu.memory_space<vmem>>, %arg4: memref<128x128xbf16, #tpu.memory_space<vmem>>, %arg5: memref<1x128xf32, #tpu.memory_space<vmem>>, %arg6: memref<128x128xbf16, #tpu.memory_space<vmem>>, %arg7: memref<1x128xf32, #tpu.memory_space<vmem>>, %arg8: memref<16x128xf32, #tpu.memory_space<vmem>>) attributes {dimension_semantics = [#tpu.dimension_semantics<parallel>], iteration_bounds = array<i64: 1>, scalar_prefetch = 0 : i64, scratch_operands = 0 : i64, tpu.core_type = #tpu.core_type<tc>, window_params = [{transform_indices = @transform_0, window_bounds = array<i64: 16, 128>}, {pipeline_mode = #tpu.pipeline_mode<synchronous>, transform_indices = @transform_1, window_bounds = array<i64: 1, 128>}, {pipeline_mode = #tpu.pipeline_mode<synchronous>, transform_indices = @transform_2, window_bounds = array<i64: 1, 128>}, {pipeline_mode = #tpu.pipeline_mode<synchronous>, transform_indices = @transform_3, window_bounds = array<i64: 128, 128>}, {pipeline_mode = #tpu.pipeline_mode<synchronous>, transform_indices = @transform_4, window_bounds = array<i64: 1, 128>}, {pipeline_mode = #tpu.pipeline_mode<synchronous>, transform_indices = @transform_5, window_bounds = array<i64: 128, 128>}, {pipeline_mode = #tpu.pipeline_mode<synchronous>, transform_indices = @transform_6, window_bounds = array<i64: 1, 128>}, {transform_indices = @transform_7, window_bounds = array<i64: 16, 128>}]} {
    %c0 = arith.constant 0 : index
    %c0_0 = arith.constant 0 : index
    %0 = vector.load %arg1[%c0, %c0_0] : memref<16x128xf32, #tpu.memory_space<vmem>>, vector<16x128xf32>
    %c0_1 = arith.constant 0 : index
    %c0_2 = arith.constant 0 : index
    %1 = vector.load %arg2[%c0_1, %c0_2] : memref<1x128xf32, #tpu.memory_space<vmem>>, vector<1x128xf32>
    %c0_3 = arith.constant 0 : index
    %c0_4 = arith.constant 0 : index
    %2 = vector.load %arg3[%c0_3, %c0_4] : memref<1x128xf32, #tpu.memory_space<vmem>>, vector<1x128xf32>
    %cst = arith.constant dense<0.000000e+00> : vector<16xf32>
    %3 = vector.multi_reduction <add>, %0, %cst [1] : vector<16x128xf32> to vector<16xf32>
    %4 = vector.shape_cast %3 : vector<16xf32> to vector<16x1xf32>
    %cst_5 = arith.constant 3.125000e-02 : f32
    %5 = vector.broadcast %cst_5 : f32 to vector<16x1xf32>
    %6 = arith.mulf %4, %5 : vector<16x1xf32>
    %7 = vector.broadcast %6 : vector<16x1xf32> to vector<16x128xf32>
    %8 = arith.subf %0, %7 : vector<16x128xf32>
    %9 = tpu.iota {dimensions = array<i32: 1>} : vector<16x128xi32>
    %c32_i32 = arith.constant 32 : i32
    %10 = vector.broadcast %c32_i32 : i32 to vector<16x128xi32>
    %11 = arith.cmpi slt, %9, %10 : vector<16x128xi32>
    %cst_6 = arith.constant 0.000000e+00 : f32
    %12 = vector.broadcast %cst_6 : f32 to vector<16x128xf32>
    %13 = arith.select %11, %8, %12 : vector<16x128xi1>, vector<16x128xf32>
    %14 = arith.mulf %13, %13 : vector<16x128xf32>
    %cst_7 = arith.constant dense<0.000000e+00> : vector<16xf32>
    %15 = vector.multi_reduction <add>, %14, %cst_7 [1] : vector<16x128xf32> to vector<16xf32>
    %16 = vector.shape_cast %15 : vector<16xf32> to vector<16x1xf32>
    %cst_8 = arith.constant 3.125000e-02 : f32
    %17 = vector.broadcast %cst_8 : f32 to vector<16x1xf32>
    %18 = arith.mulf %16, %17 : vector<16x1xf32>
    %cst_9 = arith.constant 9.99999974E-6 : f32
    %19 = vector.broadcast %cst_9 : f32 to vector<16x1xf32>
    %20 = arith.addf %18, %19 : vector<16x1xf32>
    %21 = math.rsqrt %20 : vector<16x1xf32>
    %22 = vector.broadcast %21 : vector<16x1xf32> to vector<16x128xf32>
    %23 = arith.mulf %13, %22 : vector<16x128xf32>
    %24 = vector.broadcast %1 : vector<1x128xf32> to vector<16x128xf32>
    %25 = arith.mulf %23, %24 : vector<16x128xf32>
    %26 = vector.broadcast %2 : vector<1x128xf32> to vector<16x128xf32>
    %27 = arith.addf %25, %26 : vector<16x128xf32>
    %28 = arith.truncf %27 : vector<16x128xf32> to vector<16x128xbf16>
    %c0_10 = arith.constant 0 : index
    %c0_11 = arith.constant 0 : index
    %29 = vector.load %arg4[%c0_10, %c0_11] : memref<128x128xbf16, #tpu.memory_space<vmem>>, vector<128x128xbf16>
    %cst_12 = arith.constant dense<0.000000e+00> : vector<16x128xf32>
    %30 = tpu.matmul %28, %29, %cst_12 {dimension_numbers = #tpu.dot_dimension_numbers<[1], [0], [0], [1], [0, 0, 1, 1], [], []>} : vector<16x128xbf16>, vector<128x128xbf16>, vector<16x128xf32> -> vector<16x128xf32>
    %c0_13 = arith.constant 0 : index
    %c0_14 = arith.constant 0 : index
    %31 = vector.load %arg5[%c0_13, %c0_14] : memref<1x128xf32, #tpu.memory_space<vmem>>, vector<1x128xf32>
    %32 = vector.broadcast %31 : vector<1x128xf32> to vector<16x128xf32>
    %33 = arith.addf %30, %32 : vector<16x128xf32>
    %cst_15 = arith.constant 5.000000e-01 : f32
    %34 = vector.broadcast %cst_15 : f32 to vector<16x128xf32>
    %35 = arith.mulf %34, %33 : vector<16x128xf32>
    %cst_16 = arith.constant 0.707106769 : f32
    %36 = vector.broadcast %cst_16 : f32 to vector<16x128xf32>
    %37 = arith.mulf %33, %36 : vector<16x128xf32>
    %38 = math.erf %37 : vector<16x128xf32>
    %cst_17 = arith.constant 1.000000e+00 : f32
    %39 = vector.broadcast %cst_17 : f32 to vector<16x128xf32>
    %40 = arith.addf %39, %38 : vector<16x128xf32>
    %41 = arith.mulf %35, %40 : vector<16x128xf32>
    %42 = arith.truncf %41 : vector<16x128xf32> to vector<16x128xbf16>
    %c0_18 = arith.constant 0 : index
    %c0_19 = arith.constant 0 : index
    %43 = vector.load %arg6[%c0_18, %c0_19] : memref<128x128xbf16, #tpu.memory_space<vmem>>, vector<128x128xbf16>
    %cst_20 = arith.constant dense<0.000000e+00> : vector<16x128xf32>
    %44 = tpu.matmul %42, %43, %cst_20 {dimension_numbers = #tpu.dot_dimension_numbers<[1], [0], [0], [1], [0, 0, 1, 1], [], []>} : vector<16x128xbf16>, vector<128x128xbf16>, vector<16x128xf32> -> vector<16x128xf32>
    %c0_21 = arith.constant 0 : index
    %c0_22 = arith.constant 0 : index
    %45 = vector.load %arg7[%c0_21, %c0_22] : memref<1x128xf32, #tpu.memory_space<vmem>>, vector<1x128xf32>
    %46 = vector.broadcast %45 : vector<1x128xf32> to vector<16x128xf32>
    %47 = arith.addf %44, %46 : vector<16x128xf32>
    %c0_23 = arith.constant 0 : index
    %c0_24 = arith.constant 0 : index
    %48 = vector.load %arg8[%c0_23, %c0_24] : memref<16x128xf32, #tpu.memory_space<vmem>>, vector<16x128xf32>
    tpu.vector_store %arg8[%c0_23, %c0_24], %47 {strides = array<i32>} : memref<16x128xf32, #tpu.memory_space<vmem>>, vector<16x128xf32>,
    return
  }
  func.func @transform_0(%arg0: i32) -> (i32, i32) {
    %c0_i32 = arith.constant 0 : i32
    %c0_i32_0 = arith.constant 0 : i32
    return %arg0, %c0_i32 : i32, i32
  }
  func.func @transform_1(%arg0: i32) -> (i32, i32) {
    %c0_i32 = arith.constant 0 : i32
    %c0_i32_0 = arith.constant 0 : i32
    %c0_i32_1 = arith.constant 0 : i32
    return %c0_i32, %c0_i32_0 : i32, i32
  }
  func.func @transform_2(%arg0: i32) -> (i32, i32) {
    %c0_i32 = arith.constant 0 : i32
    %c0_i32_0 = arith.constant 0 : i32
    %c0_i32_1 = arith.constant 0 : i32
    return %c0_i32, %c0_i32_0 : i32, i32
  }
  func.func @transform_3(%arg0: i32) -> (i32, i32) {
    %c0_i32 = arith.constant 0 : i32
    %c0_i32_0 = arith.constant 0 : i32
    %c0_i32_1 = arith.constant 0 : i32
    return %c0_i32, %c0_i32_0 : i32, i32
  }
  func.func @transform_4(%arg0: i32) -> (i32, i32) {
    %c0_i32 = arith.constant 0 : i32
    %c0_i32_0 = arith.constant 0 : i32
    %c0_i32_1 = arith.constant 0 : i32
    return %c0_i32, %c0_i32_0 : i32, i32
  }
  func.func @transform_5(%arg0: i32) -> (i32, i32) {
    %c0_i32 = arith.constant 0 : i32
    %c0_i32_0 = arith.constant 0 : i32
    %c0_i32_1 = arith.constant 0 : i32
    return %c0_i32, %c0_i32_0 : i32, i32
  }
  func.func @transform_6(%arg0: i32) -> (i32, i32) {
    %c0_i32 = arith.constant 0 : i32
    %c0_i32_0 = arith.constant 0 : i32
    %c0_i32_1 = arith.constant 0 : i32
    return %c0_i32, %c0_i32_0 : i32, i32
  }
  func.func @transform_7(%arg0: i32) -> (i32, i32) {
    %c0_i32 = arith.constant 0 : i32
    %c0_i32_0 = arith.constant 0 : i32
    return %arg0, %c0_i32 : i32, i32
  }
}

</mosaic_0001>

<bundles_post_ra>
// kernel: tpu_custom_call.1
= control target key start
LH: loop header
LB: loop body
LE: loop exit
PB: predicated region body
PF: predicated region fallthrough
CT: control target
= control target key end

     0   :  { %12 = vsyncpa [#allocation3], 0  ;;  %s752_s0 = inlined_call_operand.hbm [shape: f32[16,128], index: 0, kind: input, shape index: {}]   ;;  %s753_s1 = inlined_call_operand.hbm [shape: f32[1,128], index: 1, kind: input, shape index: {}]   ;;  %s754_s2 = inlined_call_operand.vmem [shape: f32[1,128], index: 2, kind: input, shape index: {}]   ;;  %s755_s3 = inlined_call_operand.hbm [shape: bf16[128,128], index: 3, kind: input, shape index: {}]   ;;  %s756_s4 = inlined_call_operand.vmem [shape: f32[1,128], index: 4, kind: input, shape index: {}]   ;;  %s757_s5 = inlined_call_operand.hbm [shape: bf16[128,128], index: 5, kind: input, shape index: {}]   ;;  %s758_s6 = inlined_call_operand.vmem [shape: f32[1,128], index: 6, kind: input, shape index: {}]   ;;  %s759_s7 = inlined_call_operand.hbm [shape: f32[16,128], index: 7, kind: output, shape index: {}]  }
   0x1   :  { %13 = vsyncpa [#allocation6], 0 }
   0x2   :  { %14 = vsyncpa [#allocation9], 0  ;;  %s34_s26 = sshll.u32 %s753_s1, 4  ;;  %s35_s26 = int_to_ptr.hbm [resolvable:$true] %s34_s26 }
   0x3   :  { %15 = vsyncpa [#allocation4], 0  ;;  %s655_s27 = smov [#allocation5]   ;;  %s20_s8 = sshll.u32 %s752_s0, 4  ;;  %s21_s8 = int_to_ptr.hbm [resolvable:$true] %s20_s8 }
   0x4   :  { %s36_s28 = sshll.u32 %s655_s27, 4  ;;  %s656_s9 = smov [#allocation2]   ;;  %s37_s28 = int_to_ptr.vmem [resolvable:$true] %s36_s28 }
   0x5   :  { %39 = dma.hbm_to_vmem [thread:$0]  %s35_s26, 16, %s37_s28, [#allocation6]  }
   0x6   :  { %s22_s10 = sshll.u32 %s656_s9, 4  ;;  %s657_s11 = smov 128   ;;  %s23_s10 = int_to_ptr.vmem [resolvable:$true] %s22_s10 }
   0x7   :  { %s658_s12 = smov 8   ;;  %s46_s14 = sshll.u32 %s755_s3, 4  ;;  %s47_s14 = int_to_ptr.hbm [resolvable:$true] %s46_s14 }
   0x8   :  { %28 = dma.hbm_to_vmem [thread:$0]  %s21_s8, 256, %s23_s10, [#allocation3], %s657_s11, %s657_s11, %s658_s12  }
   0x9   :  { %s659_s15 = smov [#allocation7]   ;;  %s61_s18 = sshll.u32 %s757_s5, 4  ;;  %s62_s18 = int_to_ptr.hbm [resolvable:$true] %s61_s18 }
   0xa   :  { %s48_s16 = sshll.u32 %s659_s15, 4  ;;  %s660_s19 = smov 64   ;;  %s49_s16 = int_to_ptr.vmem [resolvable:$true] %s48_s16 }
   0xb   :  { %s661_s20 = smov 4   ;;  %s662_s21 = smov [#allocation8]  }
   0xc   :  { %54 = dma.hbm_to_vmem [thread:$0]  %s47_s14, 1024, %s49_s16, [#allocation6], %s660_s19, %s660_s19, %s661_s20  }
   0xd   :  { %s63_s22 = sshll.u32 %s662_s21, 4  ;;  %s64_s22 = int_to_ptr.vmem [resolvable:$true] %s63_s22 }
   0xe   :  { %69 = dma.hbm_to_vmem [thread:$0]  %s62_s18, 1024, %s64_s22, [#allocation9], %s660_s19, %s660_s19, %s661_s20  }
   0xf   :  { %647 = dma.done.wait [#allocation3], 256  }
  0x10   :  { %648 = vsyncadd [#allocation3], 4294967040 }
  0x11   :  { %649 = dma.done.wait [#allocation6], 1040  }
  0x12   :  { %650 = vsyncadd [#allocation6], 4294966256 }
  0x13   :  { %651 = dma.done.wait [#allocation9], 1024  }
  0x14   :  { %652 = vsyncadd [#allocation9], 4294966272  ;;  %v88_v0 = vld [vmem:[#allocation2] sm:$0xff]  ;;  %v89_v1 = vld [vmem:[#allocation2 + $0x8] sm:$0xff]  ;;  %v100_v2 = vlaneseq  ;;  %s663_s25 = smov [#allocation10]   ;;  %s409_s29 = sshll.u32 %s759_s7, 4  ;;  %s410_s29 = int_to_ptr.hbm [resolvable:$true] %s409_s29 }
  0x15   :  { %92 = vadd.xlane.f32.xlu0 %v88_v0  ;;  %v497_v14 = vld [vmem:[#allocation7 + $0x38] sm:$0xff]  ;;  %v496_v15 = vld [vmem:[#allocation7 + $0x30] sm:$0xff]  ;;  %v495_v16 = vld [vmem:[#allocation7 + $0x28] sm:$0xff]  ;;  %s407_s26 = sshll.u32 %s663_s25, 4  ;;  %s408_s26 = int_to_ptr.vmem [resolvable:$true] %s407_s26 }
  0x16   :  { %v101_v3 = vand.u32 127, %v100_v2  ;;  %216 = vmatpush.bf16.msra.mxu0 %v497_v14  ;;  %v494_v17 = vld [vmem:[#allocation7 + $0x20] sm:$0xff]  ;;  %v493_v18 = vld [vmem:[#allocation7 + $0x18] sm:$0xff]  ;;  %v492_v19 = vld [vmem:[#allocation7 + $0x10] sm:$0xff] }
  0x17   :  { %v491_v20 = vld [vmem:[#allocation7 + $0x8] sm:$0xff]  ;;  %v490_v22 = vld [vmem:[#allocation7] sm:$0xff]  ;;  %v515_v41 = vld [vmem:[#allocation5] ss:$0 sm:$0xff] }
  0x18   :  { %vm102_vm0 = vcmp.lt.s32.totalorder %v101_v3, 32  ;;  %v516_v46 = vld [vmem:[%s754_s2] ss:$0 sm:$0xff]  ;;  %v505_v52 = vld [vmem:[#allocation8 + $0x38] sm:$0xff]  ;;  %v504_v56 = vld [vmem:[#allocation8 + $0x30] sm:$0xff] }
  0x19   :  { %v517_v51 = vld [vmem:[%s756_s4] ss:$0 sm:$0xff]  ;;  %387 = vmatpush.bf16.msra.mxu1 %v505_v52  ;;  %v502_v63 = vld [vmem:[#allocation8 + $0x20] sm:$0xff] }
  0x1a   :  { %217 = vmatpush.bf16.msra.mxu0 %v496_v15  ;;  %v503_v58 = vld [vmem:[#allocation8 + $0x28] sm:$0xff] }
  0x1d   :  { %94 = vadd.xlane.f32.xlu0 %v89_v1  ;;  %388 = vmatpush.bf16.msra.mxu1 %v504_v56 }
  0x1e   :  { %218 = vmatpush.bf16.msra.mxu0 %v495_v16 }
  0x21   :  { %389 = vmatpush.bf16.msra.mxu1 %v503_v58 }
  0x22   :  { %219 = vmatpush.bf16.msra.mxu0 %v494_v17 }
  0x25   :  { %390 = vmatpush.bf16.msra.mxu1 %v502_v63 }
  0x26   :  { %220 = vmatpush.bf16.msra.mxu0 %v493_v18 }
  0x2a   :  { %221 = vmatpush.bf16.msra.mxu0 %v492_v19  ;;  %v499_v19 = vld [vmem:[#allocation8 + $0x8] sm:$0xff] }
  0x2e   :  { %222 = vmatpush.bf16.msra.mxu0 %v491_v20 }
  0x32   :  { %223 = vmatpush.bf16.msra.mxu0 %v490_v22 }
  0x88   :  { %v93_v4 = vpop.xlane.xlu0 %92 }
  0x89   :  { %v96_v5 = vmul.f32 0.03125, %v93_v4 }
  0x8b   :  { %v98_v6 = vsub.f32 %v88_v0, %v96_v5  ;;  %v501_v5 = vld [vmem:[#allocation8 + $0x18] sm:$0xff] }
  0x8c   :  { %391 = vmatpush.bf16.msra.mxu1 %v501_v5 }
  0x8d   :  { %v103_v7 = vsel %vm102_vm0, %v98_v6, 0.0 }
  0x8e   :  { %v105_v8 = vmul.f32 %v103_v7, %v103_v7 }
  0x90   :  { %107 = vadd.xlane.f32.xlu1 %v105_v8  ;;  %v95_v9 = vpop.xlane.xlu0 %94 }
  0x91   :  { %v97_v10 = vmul.f32 0.03125, %v95_v9 }
  0x93   :  { %v99_v11 = vsub.f32 %v89_v1, %v97_v10 }
  0x95   :  { %v104_v12 = vsel %vm102_vm0, %v99_v11, 0.0  ;;  %v500_v11 = vld [vmem:[#allocation8 + $0x10] sm:$0xff] }
  0x96   :  { %v106_v13 = vmul.f32 %v104_v12, %v104_v12  ;;  %392 = vmatpush.bf16.msra.mxu1 %v500_v11 }
  0x98   :  { %109 = vadd.xlane.f32.xlu1 %v106_v13 }
  0x9a   :  { %393 = vmatpush.bf16.msra.mxu1 %v499_v19 }
 0x103   :  { %v108_v21 = vpop.xlane.xlu1 %107 }
 0x104   :  { %v111_v23 = vmul.f32 0.03125, %v108_v21 }
 0x106   :  { %v113_v24 = vadd.f32 1e-05, %v111_v23 }
 0x108   :  { %519 = vrsqrt.f32 %v113_v24  ;;  %vm121_vm2 = vweird.f32 %v113_v24 }
 0x10b   :  { %v110_v25 = vpop.xlane.xlu1 %109 }
 0x10c   :  { %v112_v26 = vmul.f32 0.03125, %v110_v25 }
 0x10e   :  { %v520_v27 = vpop.eup %519  ;;  %v114_v28 = vadd.f32 1e-05, %v112_v26  ;;  %v498_v26 = vld [vmem:[#allocation8] sm:$0xff] }
 0x10f   :  { %v116_v29 = vmul.f32 %v520_v27, %v113_v24  ;;  %vm122_vm1 = vweird.f32 %v520_v27  ;;  %394 = vmatpush.bf16.msra.mxu1 %v498_v26 }
 0x110   :  { %521 = vrsqrt.f32 %v114_v28  ;;  %vm123_vm3 = vmor %vm121_vm2, %vm122_vm1  ;;  %vm131_vm5 = vweird.f32 %v114_v28 }
 0x111   :  { %v117_v30 = vmul.f32 %v520_v27, %v116_v29 }
 0x113   :  { %v118_v31 = vmul.f32 0.5, %v117_v30 }
 0x115   :  { %v119_v32 = vsub.f32 1.5, %v118_v31 }
 0x116   :  { %v522_v33 = vpop.eup %521 }
 0x117   :  { %v120_v34 = vmul.f32 %v520_v27, %v119_v32  ;;  %v126_v35 = vmul.f32 %v522_v33, %v114_v28  ;;  %vm132_vm4 = vweird.f32 %v522_v33 }
 0x118   :  { %vm133_vm6 = vmor %vm131_vm5, %vm132_vm4 }
 0x119   :  { %v127_v36 = vmul.f32 %v522_v33, %v126_v35  ;;  %v124_v38 = vsel %vm123_vm3, %v520_v27, %v120_v34 }
 0x11a   :  { %v135_v40 = vmul.f32 %v124_v38, %v103_v7 }
 0x11b   :  { %v128_v37 = vmul.f32 0.5, %v127_v36 }
 0x11c   :  { %v140_v45 = vmul.f32 %v515_v41, %v135_v40 }
 0x11d   :  { %v129_v39 = vsub.f32 1.5, %v128_v37 }
 0x11e   :  { %v145_v48 = vadd.f32 %v516_v46, %v140_v45 }
 0x11f   :  { %v130_v42 = vmul.f32 %v522_v33, %v129_v39 }
 0x121   :  { %v134_v43 = vsel %vm133_vm6, %v522_v33, %v130_v42 }
 0x122   :  { %v136_v44 = vmul.f32 %v134_v43, %v104_v12 }
 0x124   :  { %v141_v47 = vmul.f32 %v515_v41, %v136_v44 }
 0x126   :  { %v146_v49 = vadd.f32 %v516_v46, %v141_v47 }
 0x128   :  { %v147_v50 = vpack.c.bf16 %v146_v49, %v145_v48 }
 0x12a   :  { %224 = vmatmul.bf16.vlgmr.msra.gmra.mxu0 %v147_v50 }
 0x1a7   :  { %v225_v53 = vpop.f32.mrf.mxu0 }
 0x1a8   :  { %v725_v54 = vadd.f32 %v517_v51, %v225_v53 }
 0x1aa   :  { %v728_v55 = vmul.f32 0.70710677, %v725_v54 }
 0x1ac   :  { %v234_v57 = vmul.f32 %v728_v55, %v728_v55 }
 0x1ae   :  { %v235_v59 = vmin.f32 %v234_v57, 16.0 }
 0x1af   :  { %v227_v60 = vpop.f32.mrf.mxu0 }
 0x1b0   :  { %v236_v61 = vmul.f32 2.1237322e-06, %v235_v59  ;;  %v732_v62 = vadd.f32 %v517_v51, %v227_v60  ;;  %v247_v0 = vmul.f32 3.8918573e-05, %v235_v59 }
 0x1b2   :  { %v237_v1 = vadd.f32 0.00028619796, %v236_v61  ;;  %v735_v2 = vmul.f32 0.70710677, %v732_v62  ;;  %v248_v3 = vadd.f32 0.001143296, %v247_v0 }
 0x1b4   :  { %v274_v4 = vmul.f32 %v735_v2, %v735_v2  ;;  %v238_v6 = vmul.f32 %v237_v1, %v235_v59  ;;  %v249_v7 = vmul.f32 %v248_v3, %v235_v59 }
 0x1b6   :  { %v275_v8 = vmin.f32 %v274_v4, 16.0  ;;  %v250_v9 = vadd.f32 0.014752088, %v249_v7  ;;  %v239_v13 = vadd.f32 0.0036580483, %v238_v6 }
 0x1b8   :  { %v276_v10 = vmul.f32 2.1237322e-06, %v275_v8  ;;  %v287_v12 = vmul.f32 3.8918573e-05, %v275_v8  ;;  %v251_v14 = vmul.f32 %v250_v9, %v235_v59  ;;  %v240_v21 = vmul.f32 %v239_v13, %v235_v59 }
 0x1b9   :  { %v231_v13 = vmul.f32 0.5, %v732_v62 }
 0x1ba   :  { %v277_v15 = vadd.f32 0.00028619796, %v276_v10  ;;  %v288_v16 = vadd.f32 0.001143296, %v287_v12  ;;  %v252_v17 = vadd.f32 0.112945676, %v251_v14 }
 0x1bb   :  { %v241_v28 = vadd.f32 0.05243302, %v240_v21  ;;  %v230_v12 = vmul.f32 0.5, %v725_v54 }
 0x1bc   :  { %v278_v18 = vmul.f32 %v277_v15, %v275_v8  ;;  %v289_v20 = vmul.f32 %v288_v16, %v275_v8  ;;  %v253_v22 = vmul.f32 %v252_v17, %v235_v59 }
 0x1bd   :  { %v242_v34 = vmul.f32 %v241_v28, %v235_v59 }
 0x1be   :  { %v279_v23 = vadd.f32 0.0036580483, %v278_v18  ;;  %v290_v24 = vadd.f32 0.014752088, %v289_v20  ;;  %v254_v25 = vadd.f32 0.4994258, %v253_v22 }
 0x1bf   :  { %v243_v38 = vadd.f32 0.18741608, %v242_v34 }
 0x1c0   :  { %v291_v27 = vmul.f32 %v290_v24, %v275_v8  ;;  %v255_v29 = vmul.f32 %v254_v25, %v235_v59  ;;  %v280_v30 = vmul.f32 %v279_v23, %v275_v8 }
 0x1c1   :  { %v244_v43 = vmul.f32 %v243_v38, %v235_v59 }
 0x1c2   :  { %v292_v31 = vadd.f32 0.112945676, %v291_v27  ;;  %v256_v32 = vadd.f32 1.0, %v255_v29  ;;  %v281_v35 = vadd.f32 0.05243302, %v280_v30 }
 0x1c3   :  { %v245_v49 = vadd.f32 1.1283791, %v244_v43 }
 0x1c4   :  { %v293_v33 = vmul.f32 %v292_v31, %v275_v8  ;;  %523 = vrcp.f32 %v256_v32  ;;  %v282_v39 = vmul.f32 %v281_v35, %v275_v8  ;;  %v268_v46 = vand.u32 2147483648, %v256_v32 }
 0x1c5   :  { %v266_v48 = vand.u32 2147483647, %v256_v32  ;;  %vm262_vm8 = vweird.f32 %v256_v32  ;;  %v246_v58 = vmul.f32 %v245_v49, %v728_v55 }
 0x1c6   :  { %v294_v36 = vadd.f32 0.4994258, %v293_v33  ;;  %v283_v44 = vadd.f32 0.18741608, %v282_v39  ;;  %v269_v53 = vor.u32 1.1754944e-38, %v268_v46 }
 0x1c7   :  { %vm267_vm10 = vcmp.eq.f32.partialorder %v266_v48, 8.507059e+37 }
 0x1c8   :  { %v295_v37 = vmul.f32 %v294_v36, %v275_v8  ;;  %v284_v51 = vmul.f32 %v283_v44, %v275_v8 }
 0x1ca   :  { %v296_v40 = vadd.f32 1.0, %v295_v37  ;;  %v524_v41 = vpop.eup %523  ;;  %v285_v61 = vadd.f32 1.1283791, %v284_v51 }
 0x1cb   :  { %v258_v42 = vmul.f32 %v524_v41, %v256_v32  ;;  %vm263_vm7 = vweird.f32 %v524_v41 }
 0x1cc   :  { %525 = vrcp.f32 %v296_v40  ;;  %vm264_vm9 = vmor %vm262_vm8, %vm263_vm7  ;;  %v308_v63 = vand.u32 2147483648, %v296_v40  ;;  %v306_v3 = vand.u32 2147483647, %v296_v40  ;;  %vm302_vm12 = vweird.f32 %v296_v40 }
 0x1cd   :  { %v259_v45 = vsub.f32 1.0, %v258_v42  ;;  %v286_v6 = vmul.f32 %v285_v61, %v735_v2  ;;  %v518_v2 = vld [vmem:[%s758_s6] ss:$0 sm:$0xff] }
 0x1ce   :  { %v309_v5 = vor.u32 1.1754944e-38, %v308_v63  ;;  %vm307_vm14 = vcmp.eq.f32.partialorder %v306_v3, 8.507059e+37 }
 0x1cf   :  { %v260_v47 = vmul.f32 %v524_v41, %v259_v45 }
 0x1d1   :  { %v261_v52 = vadd.f32 %v524_v41, %v260_v47 }
 0x1d2   :  { %v526_v50 = vpop.eup %525 }
 0x1d3   :  { %v298_v56 = vmul.f32 %v526_v50, %v296_v40  ;;  %v265_v57 = vsel %vm264_vm9, %v524_v41, %v261_v52  ;;  %vm303_vm11 = vweird.f32 %v526_v50 }
 0x1d4   :  { %v270_v60 = vsel %vm267_vm10, %v269_v53, %v265_v57  ;;  %vm304_vm13 = vmor %vm302_vm12, %vm303_vm11 }
 0x1d5   :  { %v299_v59 = vsub.f32 1.0, %v298_v56  ;;  %v271_v0 = vmul.f32 %v270_v60, %v246_v58 }
 0x1d7   :  { %v300_v1 = vmul.f32 %v526_v50, %v299_v59  ;;  %v456_v7 = vclamps-f32 %v271_v0, 1.0 }
 0x1d9   :  { %v301_v4 = vadd.f32 %v526_v50, %v300_v1  ;;  %v314_v11 = vadd.f32 1.0, %v456_v7 }
 0x1db   :  { %v305_v8 = vsel %vm304_vm13, %v526_v50, %v301_v4  ;;  %v316_v15 = vmul.f32 %v314_v11, %v230_v12 }
 0x1dc   :  { %v310_v9 = vsel %vm307_vm14, %v309_v5, %v305_v8 }
 0x1dd   :  { %v311_v10 = vmul.f32 %v310_v9, %v286_v6 }
 0x1df   :  { %v457_v55 = vclamps-f32 %v311_v10, 1.0 }
 0x1e1   :  { %v315_v14 = vadd.f32 1.0, %v457_v55 }
 0x1e3   :  { %v317_v16 = vmul.f32 %v315_v14, %v231_v13 }
 0x1e5   :  { %v318_v17 = vpack.c.bf16 %v317_v16, %v316_v15 }
 0x1e7   :  { %395 = vmatmul.bf16.vlgmr.msra.gmra.mxu1 %v318_v17 }
 0x264   :  { %v396_v18 = vpop.f32.mrf.mxu1 }
 0x265   :  { %v397_v19 = vadd.f32 %v518_v2, %v396_v18 }
 0x267   :  { %401 = vst [vmem:[#allocation10] sm:$0xff] %v397_v19 }
 0x26c   :  { %v398_v54 = vpop.f32.mrf.mxu1 }
 0x26d   :  { %v399_v62 = vadd.f32 %v518_v2, %v398_v54 }
 0x26f   :  { %402 = vst [vmem:[#allocation10 + $0x8] sm:$0xff] %v399_v62 }
 0x270   :  { %415 = dma.vmem_to_hbm [thread:$0]  %s408_s26, 256, %s410_s29, [#allocation4], %s657_s11, %s657_s11, %s658_s12  }
 0x271   :  { %653 = dma.done.wait [#allocation4], 256  }
 0x272   :  { %654 = vsyncadd [#allocation4], 4294967040 }
 0x273   :  { %420 = vsyncpa [#allocation3], 1 }
 0x274   :  { %421 = vsyncpa [#allocation6], 1 }
 0x275   :  { %422 = vsyncpa [#allocation9], 1 }
 0x276   :  { %423 = vsyncpa [#allocation4], 1 }

</bundles_post_ra>
